<compile_context>
chip_gen: v5e
topology: v5e:2x2
jax: 0.10.0
libtpu: 0.0.40
codegen_flags: <defaults>
</compile_context>

<pallas_src>
import jax
import jax.numpy as jnp
from jax.experimental import pallas as pl
from jax.experimental.pallas import tpu as pltpu

LANE = 128


def _round_up(n, m):
    return ((n + m - 1) // m) * m


# ---------------------------------------------------------------------------
# Stage 1: input 1x1 conv (dim -> Fp), tiled over (batch, time)
# ---------------------------------------------------------------------------
def _proj_kernel(x_ref, w_ref, b_ref, o_ref):
    x = x_ref[0].astype(jnp.float32)                                   # (tT, dim)
    o = jnp.dot(x, w_ref[...], preferred_element_type=jnp.float32) + b_ref[...]
    o_ref[0] = o.astype(o_ref.dtype)


# ---------------------------------------------------------------------------
# Stage 2: dilated residual stack + output 1x1 conv, one batch element per step
# ---------------------------------------------------------------------------
def _stack_kernel(f_ref, m_ref, wd_ref, bd_ref, w1_ref, b1_ref,
                  wout_ref, bout_ref, logits_ref, feat_ref, halo):
    T = f_ref.shape[1]
    Fp = f_ref.shape[2]
    L = wd_ref.shape[0]
    max_d = 2 ** (L - 1)

    m = m_ref[0].astype(jnp.float32)                                   # (T, 1)

    # Halo-padded feature buffer: rows [0, max_d) and [max_d+T, 2*max_d+T) are zero
    # (these provide the zero padding of the dilated conv); middle rows hold `feature`.
    zeros_halo = jnp.zeros((max_d, Fp), jnp.float32)
    halo[pl.ds(0, max_d), :] = zeros_halo
    halo[pl.ds(max_d + T, max_d), :] = zeros_halo
    halo[pl.ds(max_d, T), :] = f_ref[0].astype(jnp.float32)

    # Static unroll over layers; all per-layer state lives in the halo scratch ref,
    # so live ranges across layers stay bounded (no carried (T,F) value chains).
    for i in range(L):
        d = 2 ** i                                                      # dilation
        x_prev = halo[pl.ds(max_d - d, T), :]                           # feat[t-d] (0-padded)
        x_mid = halo[pl.ds(max_d, T), :]                                # feat[t]
        x_next = halo[pl.ds(max_d + d, T), :]                           # feat[t+d] (0-padded)

        # Fused 3-tap dilated conv: one MXU call with K = 3*Fp.
        # Lane-concat of 128-aligned chunks is pure vreg placement (no data movement).
        xin = jnp.concatenate([x_prev, x_mid, x_next], axis=-1)         # (T, 3*Fp)
        out = jnp.dot(xin, wd_ref[i], preferred_element_type=jnp.float32) + bd_ref[i]
        out = jnp.maximum(out, 0.0)                                     # relu
        out = jnp.dot(out, w1_ref[i], preferred_element_type=jnp.float32) + b1_ref[i]
        # TODO(synk): nn.Dropout is identity in eval mode; the BatchNorm branch
        #             (use_bn=True) is never taken by SingleStageModel.forward.
        halo[pl.ds(max_d, T), :] = (x_mid + out) * m                    # residual + mask

    feat = halo[pl.ds(max_d, T), :]
    logits = (jnp.dot(feat, wout_ref[...], preferred_element_type=jnp.float32)
              + bout_ref[...]) * m
    logits_ref[0] = logits.astype(logits_ref.dtype)                     # lane-dense (T, Cp)
    feat_ref[0] = (feat * m).astype(feat_ref.dtype)                     # lane-dense (T, Fp)


def single_stage_model(x, mask, params, *, time_tile=512):
    """x: (B, T, dim) float32, mask: (B, T, 1) float32.

    Returns (logits (B, T, num_classes), feature (B, T, num_f_maps))."""
    B, T, dim = x.shape
    F = params["w_in"].shape[1]
    C = params["w_out"].shape[1]
    L = params["wd"].shape[0]
    Fp = _round_up(F, LANE)
    Cp = _round_up(C, LANE)
    max_d = 2 ** (L - 1)
    f32 = jnp.float32

    # Zero-pad channel dims to lane width; padded channels stay exactly zero everywhere.
    w_in = jnp.zeros((dim, Fp), f32).at[:, :F].set(params["w_in"])
    b_in = jnp.zeros((1, Fp), f32).at[:, :F].set(params["b_in"])
    wd = jnp.zeros((L, 3, Fp, Fp), f32).at[:, :, :F, :F].set(params["wd"])
    wd = wd.reshape(L, 3 * Fp, Fp)        # fused taps stacked along K: [t-d ; t ; t+d]
    bd = jnp.zeros((L, 1, Fp), f32).at[:, :, :F].set(params["bd"])
    w1 = jnp.zeros((L, Fp, Fp), f32).at[:, :F, :F].set(params["w1"])
    b1 = jnp.zeros((L, 1, Fp), f32).at[:, :, :F].set(params["b1"])
    w_out = jnp.zeros((Fp, Cp), f32).at[:F, :C].set(params["w_out"])
    b_out = jnp.zeros((1, Cp), f32).at[:, :C].set(params["b_out"])

    # ---- Stage 1: input projection, tiled over time ----
    tT = T if T <= time_tile else time_tile
    nT = pl.cdiv(T, tT)

    def _const2(arr):
        return pl.BlockSpec(arr.shape, lambda b, t: (0,) * arr.ndim)

    feature = pl.pallas_call(
        _proj_kernel,
        grid=(B, nT),
        in_specs=[
            pl.BlockSpec((1, tT, dim), lambda b, t: (b, t, 0)),
            _const2(w_in), _const2(b_in),
        ],
        out_specs=pl.BlockSpec((1, tT, Fp), lambda b, t: (b, t, 0)),
        out_shape=jax.ShapeDtypeStruct((B, T, Fp), f32),
        compiler_params=pltpu.CompilerParams(
            dimension_semantics=("parallel", "parallel")),
    )(x, w_in, b_in)

    # ---- Stage 2: dilated residual stack + output conv ----
    def _const1(arr):
        return pl.BlockSpec(arr.shape, lambda b: (0,) * arr.ndim)

    logits_p, feat_p = pl.pallas_call(
        _stack_kernel,
        grid=(B,),
        in_specs=[
            pl.BlockSpec((1, T, Fp), lambda b: (b, 0, 0)),   # feature
            pl.BlockSpec((1, T, 1), lambda b: (b, 0, 0)),    # mask
            _const1(wd), _const1(bd), _const1(w1), _const1(b1),
            _const1(w_out), _const1(b_out),
        ],
        out_specs=(
            pl.BlockSpec((1, T, Cp), lambda b: (b, 0, 0)),
            pl.BlockSpec((1, T, Fp), lambda b: (b, 0, 0)),
        ),
        out_shape=(
            jax.ShapeDtypeStruct((B, T, Cp), f32),
            jax.ShapeDtypeStruct((B, T, Fp), f32),
        ),
        scratch_shapes=[pltpu.VMEM((T + 2 * max_d, Fp), f32)],   # halo feature buffer
        compiler_params=pltpu.CompilerParams(
            dimension_semantics=("parallel",)),
    )(feature, mask, wd, bd, w1, b1, w_out, b_out)

    # Slice the lane-padding back off.
    return logits_p[:, :, :C], feat_p[:, :, :F]


def reference(x, mask, params):
    """Pure-JAX reference with identical (B, T, C) layout, for verification."""
    B, T, _ = x.shape
    feat = x @ params["w_in"] + params["b_in"]
    L = params["wd"].shape[0]
    for i in range(L):
        d = 2 ** i
        wd = params["wd"][i]
        x_prev = jnp.pad(feat, ((0, 0), (d, 0), (0, 0)))[:, :T]
        x_next = jnp.pad(feat, ((0, 0), (0, d), (0, 0)))[:, d:]
        out = x_prev @ wd[0] + feat @ wd[1] + x_next @ wd[2] + params["bd"][i]
        out = jnp.maximum(out, 0.0)
        out = out @ params["w1"][i] + params["b1"][i]
        feat = (feat + out) * mask
    logits = (feat @ params["w_out"] + params["b_out"]) * mask
    return logits, feat * mask


def init_params(key, num_layers, num_f_maps, dim, num_classes):
    ks = jax.random.split(key, 10)
    scale = 0.1
    return {
        "w_in": scale * jax.random.normal(ks[0], (dim, num_f_maps), jnp.float32),
        "b_in": scale * jax.random.normal(ks[1], (1, num_f_maps), jnp.float32),
        # dilated conv weights, taps ordered [t-d, t, t+d], each (Cin, Cout)
        "wd": scale * jax.random.normal(ks[2], (num_layers, 3, num_f_maps, num_f_maps), jnp.float32),
        "bd": scale * jax.random.normal(ks[3], (num_layers, 1, num_f_maps), jnp.float32),
        "w1": scale * jax.random.normal(ks[4], (num_layers, num_f_maps, num_f_maps), jnp.float32),
        "b1": scale * jax.random.normal(ks[5], (num_layers, 1, num_f_maps), jnp.float32),
        "w_out": scale * jax.random.normal(ks[6], (num_f_maps, num_classes), jnp.float32),
        "b_out": scale * jax.random.normal(ks[7], (1, num_classes), jnp.float32),
    }


if __name__ == "__main__":
    B, T, dim = 2, 16, 8
    num_layers, num_f_maps, num_classes = 3, 16, 4

    key = jax.random.PRNGKey(0)
    kx, km, kp = jax.random.split(key, 3)
    x = jax.random.normal(kx, (B, T, dim), jnp.float32)
    # binary mask over time (as in MS-TCN: mask[:, 0:1, :]); here layout (B, T, 1)
    mask = (jax.random.uniform(km, (B, T, 1)) > 0.2).astype(jnp.float32)
    params = init_params(kp, num_layers, num_f_maps, dim, num_classes)

    logits, feat = single_stage_model(x, mask, params)
    jax.block_until_ready((logits, feat))

    ref_logits, ref_feat = reference(x, mask, params)
    assert jnp.allclose(logits, ref_logits, atol=1e-4, rtol=1e-4)
    assert jnp.allclose(feat, ref_feat, atol=1e-4, rtol=1e-4)

    print("KERNEL_OK")
</pallas_src>

<mosaic_0001>
module attributes {stable_mosaic.version = 11 : i64} {
  func.func @_proj_kernel(%arg0: i32, %arg1: i32, %arg2: memref<1x16x8xf32, #tpu.memory_space<vmem>>, %arg3: memref<8x128xf32, #tpu.memory_space<vmem>>, %arg4: memref<1x128xf32, #tpu.memory_space<vmem>>, %arg5: memref<1x16x128xf32, #tpu.memory_space<vmem>>) attributes {dimension_semantics = [#tpu.dimension_semantics<parallel>, #tpu.dimension_semantics<parallel>], iteration_bounds = array<i64: 2, 1>, scalar_prefetch = 0 : i64, scratch_operands = 0 : i64, tpu.core_type = #tpu.core_type<tc>, window_params = [{transform_indices = @transform_0, window_bounds = array<i64: 1, 16, 8>}, {pipeline_mode = #tpu.pipeline_mode<synchronous>, transform_indices = @transform_1, window_bounds = array<i64: 8, 128>}, {pipeline_mode = #tpu.pipeline_mode<synchronous>, transform_indices = @transform_2, window_bounds = array<i64: 1, 128>}, {transform_indices = @transform_3, window_bounds = array<i64: 1, 16, 128>}]} {
    %c0 = arith.constant 0 : index
    %c0_0 = arith.constant 0 : index
    %c0_1 = arith.constant 0 : index
    %0 = vector.load %arg2[%c0, %c0_0, %c0_1] : memref<1x16x8xf32, #tpu.memory_space<vmem>>, vector<1x16x8xf32>
    %1 = vector.shape_cast %0 : vector<1x16x8xf32> to vector<16x8xf32>
    %c0_2 = arith.constant 0 : index
    %c0_3 = arith.constant 0 : index
    %2 = vector.load %arg3[%c0_2, %c0_3] : memref<8x128xf32, #tpu.memory_space<vmem>>, vector<8x128xf32>
    %cst = arith.constant dense<0.000000e+00> : vector<16x128xf32>
    %3 = tpu.matmul %1, %2, %cst {dimension_numbers = #tpu.dot_dimension_numbers<[1], [0], [0], [1], [0, 0, 1, 1], [], []>} : vector<16x8xf32>, vector<8x128xf32>, vector<16x128xf32> -> vector<16x128xf32>
    %c0_4 = arith.constant 0 : index
    %c0_5 = arith.constant 0 : index
    %4 = vector.load %arg4[%c0_4, %c0_5] : memref<1x128xf32, #tpu.memory_space<vmem>>, vector<1x128xf32>
    %5 = vector.broadcast %4 : vector<1x128xf32> to vector<16x128xf32>
    %6 = arith.addf %3, %5 : vector<16x128xf32>
    %c0_6 = arith.constant 0 : index
    %c0_7 = arith.constant 0 : index
    %c0_8 = arith.constant 0 : index
    %7 = vector.load %arg5[%c0_6, %c0_7, %c0_8] : memref<1x16x128xf32, #tpu.memory_space<vmem>>, vector<1x16x128xf32>
    %8 = vector.shape_cast %7 : vector<1x16x128xf32> to vector<16x128xf32>
    %9 = vector.shape_cast %6 : vector<16x128xf32> to vector<1x16x128xf32>
    tpu.vector_store %arg5[%c0_6, %c0_7, %c0_8], %9 {strides = array<i32>} : memref<1x16x128xf32, #tpu.memory_space<vmem>>, vector<1x16x128xf32>,
    return
  }
  func.func @transform_0(%arg0: i32, %arg1: i32) -> (i32, i32, i32) {
    %c0_i32 = arith.constant 0 : i32
    %c0_i32_0 = arith.constant 0 : i32
    return %arg0, %arg1, %c0_i32 : i32, i32, i32
  }
  func.func @transform_1(%arg0: i32, %arg1: i32) -> (i32, i32) {
    %c0_i32 = arith.constant 0 : i32
    %c0_i32_0 = arith.constant 0 : i32
    %c0_i32_1 = arith.constant 0 : i32
    return %c0_i32, %c0_i32_0 : i32, i32
  }
  func.func @transform_2(%arg0: i32, %arg1: i32) -> (i32, i32) {
    %c0_i32 = arith.constant 0 : i32
    %c0_i32_0 = arith.constant 0 : i32
    %c0_i32_1 = arith.constant 0 : i32
    return %c0_i32, %c0_i32_0 : i32, i32
  }
  func.func @transform_3(%arg0: i32, %arg1: i32) -> (i32, i32, i32) {
    %c0_i32 = arith.constant 0 : i32
    %c0_i32_0 = arith.constant 0 : i32
    return %arg0, %arg1, %c0_i32 : i32, i32, i32
  }
}

</mosaic_0001>

<bundles_post_ra>
// kernel: tpu_custom_call.1
= control target key start
LH: loop header
LB: loop body
LE: loop exit
PB: predicated region body
PF: predicated region fallthrough
CT: control target
= control target key end

     0   :  { %8 = vsyncpa [#allocation3], 0  ;;  %s617_s0 = inlined_call_operand.vmem [shape: f32[2,16,8], index: 0, kind: input, shape index: {}]   ;;  %s618_s1 = inlined_call_operand.vmem [shape: f32[8,128], index: 1, kind: input, shape index: {}]   ;;  %s619_s2 = inlined_call_operand.vmem [shape: f32[1,128], index: 2, kind: input, shape index: {}]   ;;  %s620_s3 = inlined_call_operand.hbm [shape: f32[2,16,128], index: 3, kind: output, shape index: {}]  }
   0x1   :  { %10 = vsyncpa [#allocation3 + $0x1], 0  ;;  %s514_s12 = smov 0   ;;  %s516_s13 = smov 0  }
   0x2   :  { %s518_s14 = smov 0   ;;  %s520_s15 = smov 0  }
   0x3   :  { %s522_s16 = smov 0   ;;  %s524_s17 = smov 0  }
   0x4 LB: > { %s336_s18 = sadd.s32 4294967295, %s490_s17   ;;  %s337_s19 = sadd.s32 4294967294, %s490_s17   ;;  %s490_s17 = sphi %s524_s17, %s16_s17   ;;  %s486_s16 = sphi %s522_s16, %s627_s16   ;;  %s482_s15 = sphi %s520_s15, %s626_s15   ;;  %s478_s14 = sphi %s518_s14, %s625_s14   ;;  %s474_s13 = sphi %s516_s13, %s624_s13   ;;  %s470_s12 = sphi %s514_s12, %s623_s12  }
   0x5   : > { %s28_s20 = sadd.s32 1, %s486_s16  ;;  %s107_s21 = sadd.s32 1, %s478_s14 }
   0x6   : > { %p30_p0 = scmp.ge.s32.totalorder %s28_s20, 2  ;;  %p117_p1 = scmp.ne.s32.totalorder %s478_s14, %s474_s13 }
   0x7   : > { %p118_p2 = scmp.eq.s32.totalorder %s336_s18, 1  ;;  %p123_p3 = scmp.ne.s32.totalorder %s474_s13, %s470_s12 }
   0x8   : > { %s629_s20 = smov (%p30_p0, %s28_s20), 0  ;;  %p124_p5 = scmp.eq.s32.totalorder %s337_s19, 1 }
   0x9   : > { %p554_p4 = por %p118_p2, %p117_p1  ;;  %s102_s23 = ssub.s32 %s486_s16, %s629_s20 }
   0xa   : > { %p340_p6 = scmp.ge.s32.totalorder %s490_s17, 1  ;;  %p105_p7 = scmp.eq.s32.totalorder %s102_s23, 0 }
   0xb   : > { %p561_p8 = por %p124_p5, %p123_p3  ;;  %p161_p9 = scmp.lt.s32.totalorder %s490_s17, 3 }
   0xc   : > { %s567_s25 = scalar_select %p105_p7, %s478_s14, %s107_s21  }
   0xd   : > { %p162_p10 = pnand %p340_p6, %p161_p9 }
   0xe   : > { %p190_p11 = scmp.lt.s32.totalorder (!%p162_p10), %s482_s15, 1  ;;  %s186_s6 = sand.u32 (!%p162_p10), 1, %s474_s13  }
   0xf   : > { %165 = sbr.rel (%p162_p10) target bundleno = 158 (0x9e), region = 32  ;;  %s341_s7 = sshll.u32 (!%p162_p10), %s186_s6, 4 }
  0x10   : > { %s352_s8 = sshll.u32 (!%p162_p10), %s482_s15, 4  ;;  %s188_s21 = scalar_lea.vmem (!%p162_p10), [#allocation2], %s341_s7 }
  0x11   : > { %s253_s11 = scalar_lea.hbm (!%p162_p10), %s620_s3, %s352_s8  ;;  %s254_s23 = sshll.u32 (!%p162_p10), %s188_s21, 4  ;;  %s255_s23 = int_to_ptr.vmem [resolvable:$true] %s254_s23 }
  0x12   : > { %s256_s26 = sshll.u32 (!%p162_p10), %s253_s11, 4  ;;  %s432_s4 = scalar_lea.hbm (!%p162_p10), %s620_s3, 32  ;;  %s257_s26 = int_to_ptr.hbm [resolvable:$true] %s256_s26 }
  0x13   : > { %s426_s27 = sshra.s32 (!%p162_p10), %s257_s26, 4  ;;  %s427_s27 = int_to_ptr.hbm [resolvable:$true] %s426_s27 }
  0x14   : > { %v202_v0 = vld [vmem:[%s618_s1] sm:$0xff]  ;;  %s191_s28 = scalar_select %p190_p11, %s482_s15, 1  ;;  %vm207_vm0 = vcmask 64512  }
  0x15   : > { %229 = vmatpush.msra.mxu0 %v202_v0  ;;  %353 = vmatpush.msra.mxu1 %v202_v0  ;;  %v411_v3 = vld [vmem:[%s619_s2] ss:$0 sm:$0xff]  ;;  %s240_s15 = scalar_lea.sflag [#allocation3], %s186_s6  ;;  %p433_p1 = scmp.lt.s32.totalorder %s427_s27, %s620_s3 }
  0x16   : > { %s351_s29 = sshll.u32 %s191_s28, 4  ;;  %s428_s28 = scalar_lea.hbm %s427_s27, 16 }
  0x17   : > { %s197_s5 = scalar_lea.vmem %s617_s0, %s351_s29  ;;  %p429_p12 = scmp.ne.s32.totalorder %s427_s27, %s428_s28 }
  0x18   : > { %v200_v1 = vld [vmem:[%s197_s5] sm:$0xff]  ;;  %v201_v2 = vld [vmem:[%s197_s5 + $0x8] sm:$0xff]  ;;  %p434_p2 = scmp.lt.s32.totalorder %s432_s4, %s428_s28 }
  0x19   : > { %344 = vmatmul.msk.f32.vlgmr.msra.gmra.mxu0 %vm207_vm0, %v200_v1  ;;  %345 = vmatmul.msk.f32.vlgmr.msra.gmra.mxu1 %vm207_vm0, %v201_v2  ;;  %p430_p13 = pnand %p429_p12, %p554_p4 }
  0x1a   : > { %p435_p3 = por %p434_p2, %p433_p1 }
  0x1b   : > { %p431_p0 = pneg %p430_p13 }
  0x1d   : > { %p436_p5 = pnand %p435_p3, %p431_p0 }
  0x96   : > { %v231_v4 = vpop.f32.mrf.mxu0  ;;  %v234_v5 = vpop.f32.mrf.mxu1 }
  0x97   : > { %v232_v6 = vadd.f32 %v411_v3, %v231_v4  ;;  %v235_v7 = vadd.f32 %v411_v3, %v234_v5 }
  0x99   : > { %237 = vst [vmem:[%s188_s21] sm:$0xff] %v232_v6 }
  0x9a   : > { %238 = vst [vmem:[%s188_s21 + $0x8] sm:$0xff] %v235_v7 }
  0x9b   : > { %439 = shalt.err (!%p436_p5)
}
  0x9c   : > { %s492_s6 = smov 128   ;;  %s493_s8 = smov 8  }
  0x9d   : > { %354 = dma.vmem_to_hbm [thread:$0]  (%p554_p4), %s255_s23, 256, %s257_s26, %s240_s15, %s492_s6, %s492_s6, %s493_s8  }
  0x9e PF: > { %p360_p6 = scmp.ge.s32.totalorder %s490_s17, 2  ;;  %s271_s9 = sand.u32 1, %s470_s12  }
  0x9f   : > { %s272_s10 = scalar_lea.sflag [#allocation3], %s271_s9 }
  0xa0   : > { %p357_p7 = pnand %p360_p6, %p561_p8 }
  0xa2   : > { %p358_p9 = pneg %p357_p7 }
  0xa4   : > { %465 = dma.done.wait (%p358_p9), %s272_s10, 256  }
  0xa5   : > { %467 = vsyncadd (%p358_p9), %s272_s10, 4294967040  ;;  %s16_s17 = sadd.s32 1, %s490_s17   ;;  %s623_s12 = smov %s474_s13 }
  0xa6   : > { %p13_p10 = scmp.ge.s32.totalorder %s16_s17, 4   ;;  %s624_s13 = smov %s478_s14 }
  0xa7   : > { %s625_s14 = smov %s567_s25  ;;  %s626_s15 = smov %s486_s16 }
  0xa8   : > { %s627_s16 = smov %s629_s20  ;;  %15 = sbr.rel (!%p13_p10) target bundleno = 4 (0x4), region = 67 }
  0xad   :  { %278 = vsyncpa [#allocation3], 1 }
  0xae   :  { %280 = vsyncpa [#allocation3 + $0x1], 1 }

</bundles_post_ra>
